<compile_context>
chip_gen: v7x
topology: tpu7x:2x2x1
jax: 0.10.0
libtpu: 0.0.40
codegen_flags: <defaults>
</compile_context>

<pallas_src>
import functools

import jax
import jax.numpy as jnp
from jax import lax
from jax.experimental import pallas as pl
from jax.experimental.pallas import tpu as pltpu


def _dice_ce_kernel(x_ref, t_ref, inter_ref, card_ref, ce_ref,
                    inter_acc, card_acc, ce_acc,
                    *, num_classes, tile_h, width, fold_rows, unroll):
    h_i = pl.program_id(1)
    C, TH, W, R = num_classes, tile_h, width, fold_rows

    @pl.when(h_i == 0)
    def _init():
        inter_acc[...] = jnp.zeros_like(inter_acc)
        card_acc[...] = jnp.zeros_like(card_acc)
        ce_acc[...] = jnp.zeros_like(ce_acc)

    t = t_ref[0]                                   # (TH, W) int32 labels
    xv = x_ref.at[0]                               # (C, TH, W) logits view

    def xc(c):                                     # one class slice, f32
        return xv[c].astype(jnp.float32)

    def fold(a):                                   # (TH, W) -> (R, W), VPU adds
        if TH == R:
            return a
        return jnp.sum(a.reshape(TH // R, R, W), axis=0)

    # ---- pass 1: class max (pure per-vreg VPU ops across C slices) ----
    if unroll:
        m = xc(0)
        for c in range(1, C):
            m = jnp.maximum(m, xc(c))
    else:
        m = lax.fori_loop(1, C, lambda c, acc: jnp.maximum(acc, xc(c)), xc(0))

    # ---- pass 2: exp-sum fused with target-logit gather (one re-read of x) ----
    if unroll:
        s = jnp.zeros_like(m)
        x_t = jnp.zeros_like(m)
        for c in range(C):
            v = xc(c)
            s = s + jnp.exp(v - m)
            x_t = x_t + jnp.where(t == c, v, 0.0)
    else:
        def _sum_body(c, carry):
            s, x_t = carry
            v = xc(c)
            return s + jnp.exp(v - m), x_t + jnp.where(t == c, v, 0.0)
        s, x_t = lax.fori_loop(0, C, _sum_body,
                               (jnp.zeros_like(m), jnp.zeros_like(m)))

    inv_s = pl.reciprocal(s, approx=True)          # EUP slot, nearly free
    log_s = jnp.log(s)

    # per-pixel CE = (max + logsumexp) - x_target, folded over tile-H sublanes
    ce_acc[...] += fold((m + log_s) - x_t)

    # ---- pass 3: dice stats; recompute exp (EUP) instead of keeping C live
    #      (TH, W) temporaries; fold TH before the tiny (C, R, W) RMW. ----
    def _acc_one(c):
        p = jnp.exp(xc(c) - m) * inv_s             # prob of class c
        mk = t == c
        inter_acc[c] += fold(jnp.where(mk, p, 0.0))
        card_acc[c] += fold(p + jnp.where(mk, 1.0, 0.0))

    if unroll:
        for c in range(C):
            _acc_one(c)
    else:
        @pl.loop(0, C)
        def _(c):
            _acc_one(c)

    @pl.when(h_i == pl.num_programs(1) - 1)
    def _finalize():
        # Per-batch partial sums only; exact ratio / means happen in the wrapper.
        inter_ref[0] = jnp.sum(inter_acc[...], axis=1)     # (C, W)
        card_ref[0] = jnp.sum(card_acc[...], axis=1)       # (C, W)
        ce_ref[0] = ce_acc[...]                            # (R, W)


def _vmem_budgets():
    """(per-logits-tile budget, vmem_limit_bytes) chosen from physical VMEM."""
    try:
        cap = getattr(pltpu.get_tpu_info(), "vmem_capacity_bytes", None)
    except Exception:
        cap = None
    if cap is None:
        cap = 64 * 1024 * 1024                     # conservative (v7x-sized)
    if cap >= 96 * 1024 * 1024:                    # v5e / v6e: 128 MiB physical
        return 6 * 1024 * 1024, 64 * 1024 * 1024
    return 3 * 1024 * 1024, 40 * 1024 * 1024       # v7x: 64 MiB physical


def _choose_tile_h(H, C, W, itemsize, tile_budget):
    """Largest multiple-of-8 divisor of H whose (C, TH, W) logits tile fits."""
    if H % 8 != 0:
        return H                                   # block dim == full dim is legal
    divisors = [th for th in range(8, H + 1, 8) if H % th == 0]
    fitting = [th for th in divisors if C * th * W * itemsize <= tile_budget]
    return max(fitting) if fitting else min(divisors)


def dice_ce_loss(inputs, targets, smooth=1.0, tile_h=None):
    """inputs: (N, C, H, W) float logits (f32/bf16); targets: (N, H, W) int labels."""
    # TODO(synk): no ignore_index / out-of-range-label handling (labels are
    # assumed in [0, C), as torch.eye(C)[targets] requires) and weight=None only.
    N, C, H, W = inputs.shape
    targets = targets.astype(jnp.int32)
    tile_budget, vmem_limit = _vmem_budgets()
    TH = tile_h if tile_h is not None else _choose_tile_h(
        H, C, W, inputs.dtype.itemsize, tile_budget)
    R = 8 if TH % 8 == 0 else TH                   # fold tile-H down to 8 sublanes
    grid = (N, H // TH)
    unroll = C <= 8                                # dynamic class loops for big C

    kernel = functools.partial(
        _dice_ce_kernel, num_classes=C, tile_h=TH, width=W, fold_rows=R,
        unroll=unroll)

    cost = pl.CostEstimate(
        flops=10 * N * C * H * W,
        transcendentals=(2 * C + 2) * N * H * W,
        bytes_accessed=(inputs.size * inputs.dtype.itemsize
                        + targets.size * 4 + (2 * C + R) * N * W * 4))

    inter_p, card_p, ce_p = pl.pallas_call(
        kernel,
        out_shape=(jax.ShapeDtypeStruct((N, C, W), jnp.float32),
                   jax.ShapeDtypeStruct((N, C, W), jnp.float32),
                   jax.ShapeDtypeStruct((N, R, W), jnp.float32)),
        grid_spec=pltpu.PrefetchScalarGridSpec(
            num_scalar_prefetch=0,
            grid=grid,
            in_specs=[
                pl.BlockSpec((1, C, TH, W), lambda n, h: (n, 0, h, 0)),
                pl.BlockSpec((1, TH, W), lambda n, h: (n, h, 0)),
            ],
            out_specs=[
                pl.BlockSpec((1, C, W), lambda n, h: (n, 0, 0)),
                pl.BlockSpec((1, C, W), lambda n, h: (n, 0, 0)),
                pl.BlockSpec((1, R, W), lambda n, h: (n, 0, 0)),
            ],
            scratch_shapes=[
                pltpu.VMEM((C, R, W), jnp.float32),   # sum probas[target==c], H-folded
                pltpu.VMEM((C, R, W), jnp.float32),   # sum (probas + onehot), H-folded
                pltpu.VMEM((R, W), jnp.float32),      # per-pixel CE, H-folded
            ]),
        compiler_params=pltpu.CompilerParams(
            dimension_semantics=("parallel", "arbitrary"),
            vmem_limit_bytes=vmem_limit),
        cost_estimate=cost,
    )(inputs, targets)

    # Tiny exact combine in JAX (once per call): sum partials over batch,
    # exact division for the dice ratio, means, final blend.
    inter = jnp.sum(inter_p, axis=0)                         # (C, W)
    card = jnp.sum(card_p, axis=0)                           # (C, W)
    dice_loss = 1.0 - jnp.mean((2.0 * inter + smooth) / (card + smooth))
    ce = jnp.sum(ce_p) / float(N * H * W)
    return 0.75 * ce + 0.25 * dice_loss


def dice_ce_loss_ref(inputs, targets, smooth=1.0):
    """Pure-JAX reference mirroring the PyTorch forward exactly."""
    _, C, _, _ = inputs.shape
    onehot = jax.nn.one_hot(targets, C, axis=1, dtype=inputs.dtype)   # (N,C,H,W)
    probas = jax.nn.softmax(inputs, axis=1)
    dims = (0, 2)  # (0,) + tuple(range(2, targets.ndim)) with targets.ndim == 3
    intersection = jnp.sum(probas * onehot, axis=dims)
    cardinality = jnp.sum(probas + onehot, axis=dims)
    dice_loss = 1.0 - jnp.mean((2.0 * intersection + smooth) / (cardinality + smooth))
    logp = jax.nn.log_softmax(inputs, axis=1)
    ce = -jnp.mean(jnp.sum(onehot * logp, axis=1))
    return 0.75 * ce + 0.25 * dice_loss


if __name__ == "__main__":
    key = jax.random.PRNGKey(0)
    k1, k2, k3, k4 = jax.random.split(key, 4)

    # Small-C path (statically unrolled class loops); tile_h=8 forces a
    # multi-step H grid so the fold+accumulate path is exercised.
    N, C, H, W = 2, 4, 16, 16
    inputs = jax.random.normal(k1, (N, C, H, W), dtype=jnp.float32)
    targets = jax.random.randint(k2, (N, H, W), 0, C, dtype=jnp.int32)
    loss = jax.block_until_ready(dice_ce_loss(inputs, targets, tile_h=8))
    ref = dice_ce_loss_ref(inputs, targets)
    # tolerance accounts for the EUP approx-reciprocal softmax normalization
    assert jnp.allclose(loss, ref, rtol=2e-3, atol=2e-3), (float(loss), float(ref))

    # Larger-C path (lax.fori_loop / pl.loop class loops).
    N2, C2, H2, W2 = 1, 32, 16, 128
    inputs2 = jax.random.normal(k3, (N2, C2, H2, W2), dtype=jnp.float32)
    targets2 = jax.random.randint(k4, (N2, H2, W2), 0, C2, dtype=jnp.int32)
    loss2 = jax.block_until_ready(dice_ce_loss(inputs2, targets2))
    ref2 = dice_ce_loss_ref(inputs2, targets2)
    assert jnp.allclose(loss2, ref2, rtol=2e-3, atol=2e-3), (float(loss2), float(ref2))

    print("KERNEL_OK")
</pallas_src>

<mosaic_0001>
module attributes {stable_mosaic.version = 11 : i64} {
  func.func @_dice_ce_kernel(%arg0: i32, %arg1: i32, %arg2: memref<1x4x8x16xf32, #tpu.memory_space<vmem>>, %arg3: memref<1x8x16xi32, #tpu.memory_space<vmem>>, %arg4: memref<1x4x16xf32, #tpu.memory_space<vmem>>, %arg5: memref<1x4x16xf32, #tpu.memory_space<vmem>>, %arg6: memref<1x8x16xf32, #tpu.memory_space<vmem>>, %arg7: memref<4x8x16xf32, #tpu.memory_space<vmem>>, %arg8: memref<4x8x16xf32, #tpu.memory_space<vmem>>, %arg9: memref<8x16xf32, #tpu.memory_space<vmem>>) attributes {dimension_semantics = [#tpu.dimension_semantics<parallel>, #tpu.dimension_semantics<arbitrary>], iteration_bounds = array<i64: 2, 2>, scalar_prefetch = 0 : i64, scratch_operands = 3 : i64, tpu.core_type = #tpu.core_type<tc>, window_params = [{transform_indices = @transform_0, window_bounds = array<i64: 1, 4, 8, 16>}, {transform_indices = @transform_1, window_bounds = array<i64: 1, 8, 16>}, {transform_indices = @transform_2, window_bounds = array<i64: 1, 4, 16>}, {transform_indices = @transform_3, window_bounds = array<i64: 1, 4, 16>}, {transform_indices = @transform_4, window_bounds = array<i64: 1, 8, 16>}]} {
    %c0_i32 = arith.constant 0 : i32
    %0 = arith.cmpi eq, %arg1, %c0_i32 : i32
    %1 = arith.extui %0 : i1 to i32
    %c0_i32_0 = arith.constant 0 : i32
    %2 = arith.cmpi ne, %1, %c0_i32_0 : i32
    scf.if %2 {
      %cst_160 = arith.constant 0.000000e+00 : f32
      %192 = vector.broadcast %cst_160 : f32 to vector<4x8x16xf32>
      %c0_161 = arith.constant 0 : index
      %c0_162 = arith.constant 0 : index
      %c0_163 = arith.constant 0 : index
      %193 = vector.load %arg7[%c0_161, %c0_162, %c0_163] : memref<4x8x16xf32, #tpu.memory_space<vmem>>, vector<4x8x16xf32>
      tpu.vector_store %arg7[%c0_161, %c0_162, %c0_163], %192 {strides = array<i32>} : memref<4x8x16xf32, #tpu.memory_space<vmem>>, vector<4x8x16xf32>,
      %cst_164 = arith.constant 0.000000e+00 : f32
      %194 = vector.broadcast %cst_164 : f32 to vector<4x8x16xf32>
      %c0_165 = arith.constant 0 : index
      %c0_166 = arith.constant 0 : index
      %c0_167 = arith.constant 0 : index
      %195 = vector.load %arg8[%c0_165, %c0_166, %c0_167] : memref<4x8x16xf32, #tpu.memory_space<vmem>>, vector<4x8x16xf32>
      tpu.vector_store %arg8[%c0_165, %c0_166, %c0_167], %194 {strides = array<i32>} : memref<4x8x16xf32, #tpu.memory_space<vmem>>, vector<4x8x16xf32>,
      %cst_168 = arith.constant 0.000000e+00 : f32
      %196 = vector.broadcast %cst_168 : f32 to vector<8x16xf32>
      %c0_169 = arith.constant 0 : index
      %c0_170 = arith.constant 0 : index
      %197 = vector.load %arg9[%c0_169, %c0_170] : memref<8x16xf32, #tpu.memory_space<vmem>>, vector<8x16xf32>
      tpu.vector_store %arg9[%c0_169, %c0_170], %196 {strides = array<i32>} : memref<8x16xf32, #tpu.memory_space<vmem>>, vector<8x16xf32>,
    } else {
    }
    %c0 = arith.constant 0 : index
    %c0_1 = arith.constant 0 : index
    %c0_2 = arith.constant 0 : index
    %3 = vector.load %arg3[%c0, %c0_1, %c0_2] : memref<1x8x16xi32, #tpu.memory_space<vmem>>, vector<1x8x16xi32>
    %4 = vector.shape_cast %3 : vector<1x8x16xi32> to vector<8x16xi32>
    %c0_i32_3 = arith.constant 0 : i32
    %c0_i32_4 = arith.constant 0 : i32
    %c0_i32_5 = arith.constant 0 : i32
    %c0_i32_6 = arith.constant 0 : i32
    %5 = tpu.memref_slice %arg2[%c0_i32_3, %c0_i32_4, %c0_i32_5, %c0_i32_6] : memref<1x4x8x16xf32, #tpu.memory_space<vmem>> -> memref<1x4x8x16xf32, #tpu.memory_space<vmem>>
    %6 = tpu.memref_squeeze %5 : memref<1x4x8x16xf32, #tpu.memory_space<vmem>> -> memref<4x8x16xf32, #tpu.memory_space<vmem>>
    %c0_7 = arith.constant 0 : index
    %c0_8 = arith.constant 0 : index
    %c0_9 = arith.constant 0 : index
    %7 = vector.load %6[%c0_7, %c0_8, %c0_9] : memref<4x8x16xf32, #tpu.memory_space<vmem>>, vector<1x8x16xf32>
    %8 = vector.shape_cast %7 : vector<1x8x16xf32> to vector<8x16xf32>
    %c0_i32_10 = arith.constant 0 : i32
    %c0_i32_11 = arith.constant 0 : i32
    %c0_i32_12 = arith.constant 0 : i32
    %c0_i32_13 = arith.constant 0 : i32
    %9 = tpu.memref_slice %arg2[%c0_i32_10, %c0_i32_11, %c0_i32_12, %c0_i32_13] : memref<1x4x8x16xf32, #tpu.memory_space<vmem>> -> memref<1x4x8x16xf32, #tpu.memory_space<vmem>>
    %10 = tpu.memref_squeeze %9 : memref<1x4x8x16xf32, #tpu.memory_space<vmem>> -> memref<4x8x16xf32, #tpu.memory_space<vmem>>
    %c1 = arith.constant 1 : index
    %c0_14 = arith.constant 0 : index
    %c0_15 = arith.constant 0 : index
    %11 = vector.load %10[%c1, %c0_14, %c0_15] : memref<4x8x16xf32, #tpu.memory_space<vmem>>, vector<1x8x16xf32>
    %12 = vector.shape_cast %11 : vector<1x8x16xf32> to vector<8x16xf32>
    %13 = arith.maximumf %8, %12 : vector<8x16xf32>
    %c0_i32_16 = arith.constant 0 : i32
    %c0_i32_17 = arith.constant 0 : i32
    %c0_i32_18 = arith.constant 0 : i32
    %c0_i32_19 = arith.constant 0 : i32
    %14 = tpu.memref_slice %arg2[%c0_i32_16, %c0_i32_17, %c0_i32_18, %c0_i32_19] : memref<1x4x8x16xf32, #tpu.memory_space<vmem>> -> memref<1x4x8x16xf32, #tpu.memory_space<vmem>>
    %15 = tpu.memref_squeeze %14 : memref<1x4x8x16xf32, #tpu.memory_space<vmem>> -> memref<4x8x16xf32, #tpu.memory_space<vmem>>
    %c2 = arith.constant 2 : index
    %c0_20 = arith.constant 0 : index
    %c0_21 = arith.constant 0 : index
    %16 = vector.load %15[%c2, %c0_20, %c0_21] : memref<4x8x16xf32, #tpu.memory_space<vmem>>, vector<1x8x16xf32>
    %17 = vector.shape_cast %16 : vector<1x8x16xf32> to vector<8x16xf32>
    %18 = arith.maximumf %13, %17 : vector<8x16xf32>
    %c0_i32_22 = arith.constant 0 : i32
    %c0_i32_23 = arith.constant 0 : i32
    %c0_i32_24 = arith.constant 0 : i32
    %c0_i32_25 = arith.constant 0 : i32
    %19 = tpu.memref_slice %arg2[%c0_i32_22, %c0_i32_23, %c0_i32_24, %c0_i32_25] : memref<1x4x8x16xf32, #tpu.memory_space<vmem>> -> memref<1x4x8x16xf32, #tpu.memory_space<vmem>>
    %20 = tpu.memref_squeeze %19 : memref<1x4x8x16xf32, #tpu.memory_space<vmem>> -> memref<4x8x16xf32, #tpu.memory_space<vmem>>
    %c3 = arith.constant 3 : index
    %c0_26 = arith.constant 0 : index
    %c0_27 = arith.constant 0 : index
    %21 = vector.load %20[%c3, %c0_26, %c0_27] : memref<4x8x16xf32, #tpu.memory_space<vmem>>, vector<1x8x16xf32>
    %22 = vector.shape_cast %21 : vector<1x8x16xf32> to vector<8x16xf32>
    %23 = arith.maximumf %18, %22 : vector<8x16xf32>
    %cst = arith.constant 0.000000e+00 : f32
    %24 = vector.broadcast %cst : f32 to vector<8x16xf32>
    %cst_28 = arith.constant 0.000000e+00 : f32
    %25 = vector.broadcast %cst_28 : f32 to vector<8x16xf32>
    %c0_i32_29 = arith.constant 0 : i32
    %c0_i32_30 = arith.constant 0 : i32
    %c0_i32_31 = arith.constant 0 : i32
    %c0_i32_32 = arith.constant 0 : i32
    %26 = tpu.memref_slice %arg2[%c0_i32_29, %c0_i32_30, %c0_i32_31, %c0_i32_32] : memref<1x4x8x16xf32, #tpu.memory_space<vmem>> -> memref<1x4x8x16xf32, #tpu.memory_space<vmem>>
    %27 = tpu.memref_squeeze %26 : memref<1x4x8x16xf32, #tpu.memory_space<vmem>> -> memref<4x8x16xf32, #tpu.memory_space<vmem>>
    %c0_33 = arith.constant 0 : index
    %c0_34 = arith.constant 0 : index
    %c0_35 = arith.constant 0 : index
    %28 = vector.load %27[%c0_33, %c0_34, %c0_35] : memref<4x8x16xf32, #tpu.memory_space<vmem>>, vector<1x8x16xf32>
    %29 = vector.shape_cast %28 : vector<1x8x16xf32> to vector<8x16xf32>
    %30 = arith.subf %29, %23 : vector<8x16xf32>
    %31 = math.exp %30 : vector<8x16xf32>
    %32 = arith.addf %24, %31 : vector<8x16xf32>
    %c0_i32_36 = arith.constant 0 : i32
    %33 = vector.broadcast %c0_i32_36 : i32 to vector<8x16xi32>
    %34 = arith.cmpi eq, %4, %33 : vector<8x16xi32>
    %cst_37 = arith.constant 0.000000e+00 : f32
    %35 = vector.broadcast %cst_37 : f32 to vector<8x16xf32>
    %36 = arith.select %34, %29, %35 : vector<8x16xi1>, vector<8x16xf32>
    %37 = arith.addf %25, %36 : vector<8x16xf32>
    %c0_i32_38 = arith.constant 0 : i32
    %c0_i32_39 = arith.constant 0 : i32
    %c0_i32_40 = arith.constant 0 : i32
    %c0_i32_41 = arith.constant 0 : i32
    %38 = tpu.memref_slice %arg2[%c0_i32_38, %c0_i32_39, %c0_i32_40, %c0_i32_41] : memref<1x4x8x16xf32, #tpu.memory_space<vmem>> -> memref<1x4x8x16xf32, #tpu.memory_space<vmem>>
    %39 = tpu.memref_squeeze %38 : memref<1x4x8x16xf32, #tpu.memory_space<vmem>> -> memref<4x8x16xf32, #tpu.memory_space<vmem>>
    %c1_42 = arith.constant 1 : index
    %c0_43 = arith.constant 0 : index
    %c0_44 = arith.constant 0 : index
    %40 = vector.load %39[%c1_42, %c0_43, %c0_44] : memref<4x8x16xf32, #tpu.memory_space<vmem>>, vector<1x8x16xf32>
    %41 = vector.shape_cast %40 : vector<1x8x16xf32> to vector<8x16xf32>
    %42 = arith.subf %41, %23 : vector<8x16xf32>
    %43 = math.exp %42 : vector<8x16xf32>
    %44 = arith.addf %32, %43 : vector<8x16xf32>
    %c1_i32 = arith.constant 1 : i32
    %45 = vector.broadcast %c1_i32 : i32 to vector<8x16xi32>
    %46 = arith.cmpi eq, %4, %45 : vector<8x16xi32>
    %cst_45 = arith.constant 0.000000e+00 : f32
    %47 = vector.broadcast %cst_45 : f32 to vector<8x16xf32>
    %48 = arith.select %46, %41, %47 : vector<8x16xi1>, vector<8x16xf32>
    %49 = arith.addf %37, %48 : vector<8x16xf32>
    %c0_i32_46 = arith.constant 0 : i32
    %c0_i32_47 = arith.constant 0 : i32
    %c0_i32_48 = arith.constant 0 : i32
    %c0_i32_49 = arith.constant 0 : i32
    %50 = tpu.memref_slice %arg2[%c0_i32_46, %c0_i32_47, %c0_i32_48, %c0_i32_49] : memref<1x4x8x16xf32, #tpu.memory_space<vmem>> -> memref<1x4x8x16xf32, #tpu.memory_space<vmem>>
    %51 = tpu.memref_squeeze %50 : memref<1x4x8x16xf32, #tpu.memory_space<vmem>> -> memref<4x8x16xf32, #tpu.memory_space<vmem>>
    %c2_50 = arith.constant 2 : index
    %c0_51 = arith.constant 0 : index
    %c0_52 = arith.constant 0 : index
    %52 = vector.load %51[%c2_50, %c0_51, %c0_52] : memref<4x8x16xf32, #tpu.memory_space<vmem>>, vector<1x8x16xf32>
    %53 = vector.shape_cast %52 : vector<1x8x16xf32> to vector<8x16xf32>
    %54 = arith.subf %53, %23 : vector<8x16xf32>
    %55 = math.exp %54 : vector<8x16xf32>
    %56 = arith.addf %44, %55 : vector<8x16xf32>
    %c2_i32 = arith.constant 2 : i32
    %57 = vector.broadcast %c2_i32 : i32 to vector<8x16xi32>
    %58 = arith.cmpi eq, %4, %57 : vector<8x16xi32>
    %cst_53 = arith.constant 0.000000e+00 : f32
    %59 = vector.broadcast %cst_53 : f32 to vector<8x16xf32>
    %60 = arith.select %58, %53, %59 : vector<8x16xi1>, vector<8x16xf32>
    %61 = arith.addf %49, %60 : vector<8x16xf32>
    %c0_i32_54 = arith.constant 0 : i32
    %c0_i32_55 = arith.constant 0 : i32
    %c0_i32_56 = arith.constant 0 : i32
    %c0_i32_57 = arith.constant 0 : i32
    %62 = tpu.memref_slice %arg2[%c0_i32_54, %c0_i32_55, %c0_i32_56, %c0_i32_57] : memref<1x4x8x16xf32, #tpu.memory_space<vmem>> -> memref<1x4x8x16xf32, #tpu.memory_space<vmem>>
    %63 = tpu.memref_squeeze %62 : memref<1x4x8x16xf32, #tpu.memory_space<vmem>> -> memref<4x8x16xf32, #tpu.memory_space<vmem>>
    %c3_58 = arith.constant 3 : index
    %c0_59 = arith.constant 0 : index
    %c0_60 = arith.constant 0 : index
    %64 = vector.load %63[%c3_58, %c0_59, %c0_60] : memref<4x8x16xf32, #tpu.memory_space<vmem>>, vector<1x8x16xf32>
    %65 = vector.shape_cast %64 : vector<1x8x16xf32> to vector<8x16xf32>
    %66 = arith.subf %65, %23 : vector<8x16xf32>
    %67 = math.exp %66 : vector<8x16xf32>
    %68 = arith.addf %56, %67 : vector<8x16xf32>
    %c3_i32 = arith.constant 3 : i32
    %69 = vector.broadcast %c3_i32 : i32 to vector<8x16xi32>
    %70 = arith.cmpi eq, %4, %69 : vector<8x16xi32>
    %cst_61 = arith.constant 0.000000e+00 : f32
    %71 = vector.broadcast %cst_61 : f32 to vector<8x16xf32>
    %72 = arith.select %70, %65, %71 : vector<8x16xi1>, vector<8x16xf32>
    %73 = arith.addf %61, %72 : vector<8x16xf32>
    %74 = tpu.reciprocal %68 {approx = true} : vector<8x16xf32> -> vector<8x16xf32>
    %75 = math.log %68 : vector<8x16xf32>
    %c0_62 = arith.constant 0 : index
    %c0_63 = arith.constant 0 : index
    %76 = vector.load %arg9[%c0_62, %c0_63] : memref<8x16xf32, #tpu.memory_space<vmem>>, vector<8x16xf32>
    %77 = arith.addf %23, %75 : vector<8x16xf32>
    %78 = arith.subf %77, %73 : vector<8x16xf32>
    %79 = arith.addf %76, %78 : vector<8x16xf32>
    %c0_64 = arith.constant 0 : index
    %c0_65 = arith.constant 0 : index
    %80 = vector.load %arg9[%c0_64, %c0_65] : memref<8x16xf32, #tpu.memory_space<vmem>>, vector<8x16xf32>
    tpu.vector_store %arg9[%c0_64, %c0_65], %79 {strides = array<i32>} : memref<8x16xf32, #tpu.memory_space<vmem>>, vector<8x16xf32>,
    %c0_i32_66 = arith.constant 0 : i32
    %c0_i32_67 = arith.constant 0 : i32
    %c0_i32_68 = arith.constant 0 : i32
    %c0_i32_69 = arith.constant 0 : i32
    %81 = tpu.memref_slice %arg2[%c0_i32_66, %c0_i32_67, %c0_i32_68, %c0_i32_69] : memref<1x4x8x16xf32, #tpu.memory_space<vmem>> -> memref<1x4x8x16xf32, #tpu.memory_space<vmem>>
    %82 = tpu.memref_squeeze %81 : memref<1x4x8x16xf32, #tpu.memory_space<vmem>> -> memref<4x8x16xf32, #tpu.memory_space<vmem>>
    %c0_70 = arith.constant 0 : index
    %c0_71 = arith.constant 0 : index
    %c0_72 = arith.constant 0 : index
    %83 = vector.load %82[%c0_70, %c0_71, %c0_72] : memref<4x8x16xf32, #tpu.memory_space<vmem>>, vector<1x8x16xf32>
    %84 = vector.shape_cast %83 : vector<1x8x16xf32> to vector<8x16xf32>
    %85 = arith.subf %84, %23 : vector<8x16xf32>
    %86 = math.exp %85 : vector<8x16xf32>
    %87 = arith.mulf %86, %74 : vector<8x16xf32>
    %c0_i32_73 = arith.constant 0 : i32
    %88 = vector.broadcast %c0_i32_73 : i32 to vector<8x16xi32>
    %89 = arith.cmpi eq, %4, %88 : vector<8x16xi32>
    %c0_74 = arith.constant 0 : index
    %c0_75 = arith.constant 0 : index
    %c0_76 = arith.constant 0 : index
    %90 = vector.load %arg7[%c0_74, %c0_75, %c0_76] : memref<4x8x16xf32, #tpu.memory_space<vmem>>, vector<1x8x16xf32>
    %91 = vector.shape_cast %90 : vector<1x8x16xf32> to vector<8x16xf32>
    %cst_77 = arith.constant 0.000000e+00 : f32
    %92 = vector.broadcast %cst_77 : f32 to vector<8x16xf32>
    %93 = arith.select %89, %87, %92 : vector<8x16xi1>, vector<8x16xf32>
    %94 = arith.addf %91, %93 : vector<8x16xf32>
    %c0_78 = arith.constant 0 : index
    %c0_79 = arith.constant 0 : index
    %c0_80 = arith.constant 0 : index
    %95 = vector.load %arg7[%c0_78, %c0_79, %c0_80] : memref<4x8x16xf32, #tpu.memory_space<vmem>>, vector<1x8x16xf32>
    %96 = vector.shape_cast %95 : vector<1x8x16xf32> to vector<8x16xf32>
    %97 = vector.shape_cast %94 : vector<8x16xf32> to vector<1x8x16xf32>
    tpu.vector_store %arg7[%c0_78, %c0_79, %c0_80], %97 {strides = array<i32>} : memref<4x8x16xf32, #tpu.memory_space<vmem>>, vector<1x8x16xf32>,
    %c0_81 = arith.constant 0 : index
    %c0_82 = arith.constant 0 : index
    %c0_83 = arith.constant 0 : index
    %98 = vector.load %arg8[%c0_81, %c0_82, %c0_83] : memref<4x8x16xf32, #tpu.memory_space<vmem>>, vector<1x8x16xf32>
    %99 = vector.shape_cast %98 : vector<1x8x16xf32> to vector<8x16xf32>
    %cst_84 = arith.constant 1.000000e+00 : f32
    %cst_85 = arith.constant 0.000000e+00 : f32
    %100 = vector.broadcast %cst_84 : f32 to vector<8x16xf32>
    %101 = vector.broadcast %cst_85 : f32 to vector<8x16xf32>
    %102 = arith.select %89, %100, %101 : vector<8x16xi1>, vector<8x16xf32>
    %103 = arith.addf %87, %102 : vector<8x16xf32>
    %104 = arith.addf %99, %103 : vector<8x16xf32>
    %c0_86 = arith.constant 0 : index
    %c0_87 = arith.constant 0 : index
    %c0_88 = arith.constant 0 : index
    %105 = vector.load %arg8[%c0_86, %c0_87, %c0_88] : memref<4x8x16xf32, #tpu.memory_space<vmem>>, vector<1x8x16xf32>
    %106 = vector.shape_cast %105 : vector<1x8x16xf32> to vector<8x16xf32>
    %107 = vector.shape_cast %104 : vector<8x16xf32> to vector<1x8x16xf32>
    tpu.vector_store %arg8[%c0_86, %c0_87, %c0_88], %107 {strides = array<i32>} : memref<4x8x16xf32, #tpu.memory_space<vmem>>, vector<1x8x16xf32>,
    %c0_i32_89 = arith.constant 0 : i32
    %c0_i32_90 = arith.constant 0 : i32
    %c0_i32_91 = arith.constant 0 : i32
    %c0_i32_92 = arith.constant 0 : i32
    %108 = tpu.memref_slice %arg2[%c0_i32_89, %c0_i32_90, %c0_i32_91, %c0_i32_92] : memref<1x4x8x16xf32, #tpu.memory_space<vmem>> -> memref<1x4x8x16xf32, #tpu.memory_space<vmem>>
    %109 = tpu.memref_squeeze %108 : memref<1x4x8x16xf32, #tpu.memory_space<vmem>> -> memref<4x8x16xf32, #tpu.memory_space<vmem>>
    %c1_93 = arith.constant 1 : index
    %c0_94 = arith.constant 0 : index
    %c0_95 = arith.constant 0 : index
    %110 = vector.load %109[%c1_93, %c0_94, %c0_95] : memref<4x8x16xf32, #tpu.memory_space<vmem>>, vector<1x8x16xf32>
    %111 = vector.shape_cast %110 : vector<1x8x16xf32> to vector<8x16xf32>
    %112 = arith.subf %111, %23 : vector<8x16xf32>
    %113 = math.exp %112 : vector<8x16xf32>
    %114 = arith.mulf %113, %74 : vector<8x16xf32>
    %c1_i32_96 = arith.constant 1 : i32
    %115 = vector.broadcast %c1_i32_96 : i32 to vector<8x16xi32>
    %116 = arith.cmpi eq, %4, %115 : vector<8x16xi32>
    %c1_97 = arith.constant 1 : index
    %c0_98 = arith.constant 0 : index
    %c0_99 = arith.constant 0 : index
    %117 = vector.load %arg7[%c1_97, %c0_98, %c0_99] : memref<4x8x16xf32, #tpu.memory_space<vmem>>, vector<1x8x16xf32>
    %118 = vector.shape_cast %117 : vector<1x8x16xf32> to vector<8x16xf32>
    %cst_100 = arith.constant 0.000000e+00 : f32
    %119 = vector.broadcast %cst_100 : f32 to vector<8x16xf32>
    %120 = arith.select %116, %114, %119 : vector<8x16xi1>, vector<8x16xf32>
    %121 = arith.addf %118, %120 : vector<8x16xf32>
    %c1_101 = arith.constant 1 : index
    %c0_102 = arith.constant 0 : index
    %c0_103 = arith.constant 0 : index
    %122 = vector.load %arg7[%c1_101, %c0_102, %c0_103] : memref<4x8x16xf32, #tpu.memory_space<vmem>>, vector<1x8x16xf32>
    %123 = vector.shape_cast %122 : vector<1x8x16xf32> to vector<8x16xf32>
    %124 = vector.shape_cast %121 : vector<8x16xf32> to vector<1x8x16xf32>
    tpu.vector_store %arg7[%c1_101, %c0_102, %c0_103], %124 {strides = array<i32>} : memref<4x8x16xf32, #tpu.memory_space<vmem>>, vector<1x8x16xf32>,
    %c1_104 = arith.constant 1 : index
    %c0_105 = arith.constant 0 : index
    %c0_106 = arith.constant 0 : index
    %125 = vector.load %arg8[%c1_104, %c0_105, %c0_106] : memref<4x8x16xf32, #tpu.memory_space<vmem>>, vector<1x8x16xf32>
    %126 = vector.shape_cast %125 : vector<1x8x16xf32> to vector<8x16xf32>
    %cst_107 = arith.constant 1.000000e+00 : f32
    %cst_108 = arith.constant 0.000000e+00 : f32
    %127 = vector.broadcast %cst_107 : f32 to vector<8x16xf32>
    %128 = vector.broadcast %cst_108 : f32 to vector<8x16xf32>
    %129 = arith.select %116, %127, %128 : vector<8x16xi1>, vector<8x16xf32>
    %130 = arith.addf %114, %129 : vector<8x16xf32>
    %131 = arith.addf %126, %130 : vector<8x16xf32>
    %c1_109 = arith.constant 1 : index
    %c0_110 = arith.constant 0 : index
    %c0_111 = arith.constant 0 : index
    %132 = vector.load %arg8[%c1_109, %c0_110, %c0_111] : memref<4x8x16xf32, #tpu.memory_space<vmem>>, vector<1x8x16xf32>
    %133 = vector.shape_cast %132 : vector<1x8x16xf32> to vector<8x16xf32>
    %134 = vector.shape_cast %131 : vector<8x16xf32> to vector<1x8x16xf32>
    tpu.vector_store %arg8[%c1_109, %c0_110, %c0_111], %134 {strides = array<i32>} : memref<4x8x16xf32, #tpu.memory_space<vmem>>, vector<1x8x16xf32>,
    %c0_i32_112 = arith.constant 0 : i32
    %c0_i32_113 = arith.constant 0 : i32
    %c0_i32_114 = arith.constant 0 : i32
    %c0_i32_115 = arith.constant 0 : i32
    %135 = tpu.memref_slice %arg2[%c0_i32_112, %c0_i32_113, %c0_i32_114, %c0_i32_115] : memref<1x4x8x16xf32, #tpu.memory_space<vmem>> -> memref<1x4x8x16xf32, #tpu.memory_space<vmem>>
    %136 = tpu.memref_squeeze %135 : memref<1x4x8x16xf32, #tpu.memory_space<vmem>> -> memref<4x8x16xf32, #tpu.memory_space<vmem>>
    %c2_116 = arith.constant 2 : index
    %c0_117 = arith.constant 0 : index
    %c0_118 = arith.constant 0 : index
    %137 = vector.load %136[%c2_116, %c0_117, %c0_118] : memref<4x8x16xf32, #tpu.memory_space<vmem>>, vector<1x8x16xf32>
    %138 = vector.shape_cast %137 : vector<1x8x16xf32> to vector<8x16xf32>
    %139 = arith.subf %138, %23 : vector<8x16xf32>
    %140 = math.exp %139 : vector<8x16xf32>
    %141 = arith.mulf %140, %74 : vector<8x16xf32>
    %c2_i32_119 = arith.constant 2 : i32
    %142 = vector.broadcast %c2_i32_119 : i32 to vector<8x16xi32>
    %143 = arith.cmpi eq, %4, %142 : vector<8x16xi32>
    %c2_120 = arith.constant 2 : index
    %c0_121 = arith.constant 0 : index
    %c0_122 = arith.constant 0 : index
    %144 = vector.load %arg7[%c2_120, %c0_121, %c0_122] : memref<4x8x16xf32, #tpu.memory_space<vmem>>, vector<1x8x16xf32>
    %145 = vector.shape_cast %144 : vector<1x8x16xf32> to vector<8x16xf32>
    %cst_123 = arith.constant 0.000000e+00 : f32
    %146 = vector.broadcast %cst_123 : f32 to vector<8x16xf32>
    %147 = arith.select %143, %141, %146 : vector<8x16xi1>, vector<8x16xf32>
    %148 = arith.addf %145, %147 : vector<8x16xf32>
    %c2_124 = arith.constant 2 : index
    %c0_125 = arith.constant 0 : index
    %c0_126 = arith.constant 0 : index
    %149 = vector.load %arg7[%c2_124, %c0_125, %c0_126] : memref<4x8x16xf32, #tpu.memory_space<vmem>>, vector<1x8x16xf32>
    %150 = vector.shape_cast %149 : vector<1x8x16xf32> to vector<8x16xf32>
    %151 = vector.shape_cast %148 : vector<8x16xf32> to vector<1x8x16xf32>
    tpu.vector_store %arg7[%c2_124, %c0_125, %c0_126], %151 {strides = array<i32>} : memref<4x8x16xf32, #tpu.memory_space<vmem>>, vector<1x8x16xf32>,
    %c2_127 = arith.constant 2 : index
    %c0_128 = arith.constant 0 : index
    %c0_129 = arith.constant 0 : index
    %152 = vector.load %arg8[%c2_127, %c0_128, %c0_129] : memref<4x8x16xf32, #tpu.memory_space<vmem>>, vector<1x8x16xf32>
    %153 = vector.shape_cast %152 : vector<1x8x16xf32> to vector<8x16xf32>
    %cst_130 = arith.constant 1.000000e+00 : f32
    %cst_131 = arith.constant 0.000000e+00 : f32
    %154 = vector.broadcast %cst_130 : f32 to vector<8x16xf32>
    %155 = vector.broadcast %cst_131 : f32 to vector<8x16xf32>
    %156 = arith.select %143, %154, %155 : vector<8x16xi1>, vector<8x16xf32>
    %157 = arith.addf %141, %156 : vector<8x16xf32>
    %158 = arith.addf %153, %157 : vector<8x16xf32>
    %c2_132 = arith.constant 2 : index
    %c0_133 = arith.constant 0 : index
    %c0_134 = arith.constant 0 : index
    %159 = vector.load %arg8[%c2_132, %c0_133, %c0_134] : memref<4x8x16xf32, #tpu.memory_space<vmem>>, vector<1x8x16xf32>
    %160 = vector.shape_cast %159 : vector<1x8x16xf32> to vector<8x16xf32>
    %161 = vector.shape_cast %158 : vector<8x16xf32> to vector<1x8x16xf32>
    tpu.vector_store %arg8[%c2_132, %c0_133, %c0_134], %161 {strides = array<i32>} : memref<4x8x16xf32, #tpu.memory_space<vmem>>, vector<1x8x16xf32>,
    %c0_i32_135 = arith.constant 0 : i32
    %c0_i32_136 = arith.constant 0 : i32
    %c0_i32_137 = arith.constant 0 : i32
    %c0_i32_138 = arith.constant 0 : i32
    %162 = tpu.memref_slice %arg2[%c0_i32_135, %c0_i32_136, %c0_i32_137, %c0_i32_138] : memref<1x4x8x16xf32, #tpu.memory_space<vmem>> -> memref<1x4x8x16xf32, #tpu.memory_space<vmem>>
    %163 = tpu.memref_squeeze %162 : memref<1x4x8x16xf32, #tpu.memory_space<vmem>> -> memref<4x8x16xf32, #tpu.memory_space<vmem>>
    %c3_139 = arith.constant 3 : index
    %c0_140 = arith.constant 0 : index
    %c0_141 = arith.constant 0 : index
    %164 = vector.load %163[%c3_139, %c0_140, %c0_141] : memref<4x8x16xf32, #tpu.memory_space<vmem>>, vector<1x8x16xf32>
    %165 = vector.shape_cast %164 : vector<1x8x16xf32> to vector<8x16xf32>
    %166 = arith.subf %165, %23 : vector<8x16xf32>
    %167 = math.exp %166 : vector<8x16xf32>
    %168 = arith.mulf %167, %74 : vector<8x16xf32>
    %c3_i32_142 = arith.constant 3 : i32
    %169 = vector.broadcast %c3_i32_142 : i32 to vector<8x16xi32>
    %170 = arith.cmpi eq, %4, %169 : vector<8x16xi32>
    %c3_143 = arith.constant 3 : index
    %c0_144 = arith.constant 0 : index
    %c0_145 = arith.constant 0 : index
    %171 = vector.load %arg7[%c3_143, %c0_144, %c0_145] : memref<4x8x16xf32, #tpu.memory_space<vmem>>, vector<1x8x16xf32>
    %172 = vector.shape_cast %171 : vector<1x8x16xf32> to vector<8x16xf32>
    %cst_146 = arith.constant 0.000000e+00 : f32
    %173 = vector.broadcast %cst_146 : f32 to vector<8x16xf32>
    %174 = arith.select %170, %168, %173 : vector<8x16xi1>, vector<8x16xf32>
    %175 = arith.addf %172, %174 : vector<8x16xf32>
    %c3_147 = arith.constant 3 : index
    %c0_148 = arith.constant 0 : index
    %c0_149 = arith.constant 0 : index
    %176 = vector.load %arg7[%c3_147, %c0_148, %c0_149] : memref<4x8x16xf32, #tpu.memory_space<vmem>>, vector<1x8x16xf32>
    %177 = vector.shape_cast %176 : vector<1x8x16xf32> to vector<8x16xf32>
    %178 = vector.shape_cast %175 : vector<8x16xf32> to vector<1x8x16xf32>
    tpu.vector_store %arg7[%c3_147, %c0_148, %c0_149], %178 {strides = array<i32>} : memref<4x8x16xf32, #tpu.memory_space<vmem>>, vector<1x8x16xf32>,
    %c3_150 = arith.constant 3 : index
    %c0_151 = arith.constant 0 : index
    %c0_152 = arith.constant 0 : index
    %179 = vector.load %arg8[%c3_150, %c0_151, %c0_152] : memref<4x8x16xf32, #tpu.memory_space<vmem>>, vector<1x8x16xf32>
    %180 = vector.shape_cast %179 : vector<1x8x16xf32> to vector<8x16xf32>
    %cst_153 = arith.constant 1.000000e+00 : f32
    %cst_154 = arith.constant 0.000000e+00 : f32
    %181 = vector.broadcast %cst_153 : f32 to vector<8x16xf32>
    %182 = vector.broadcast %cst_154 : f32 to vector<8x16xf32>
    %183 = arith.select %170, %181, %182 : vector<8x16xi1>, vector<8x16xf32>
    %184 = arith.addf %168, %183 : vector<8x16xf32>
    %185 = arith.addf %180, %184 : vector<8x16xf32>
    %c3_155 = arith.constant 3 : index
    %c0_156 = arith.constant 0 : index
    %c0_157 = arith.constant 0 : index
    %186 = vector.load %arg8[%c3_155, %c0_156, %c0_157] : memref<4x8x16xf32, #tpu.memory_space<vmem>>, vector<1x8x16xf32>
    %187 = vector.shape_cast %186 : vector<1x8x16xf32> to vector<8x16xf32>
    %188 = vector.shape_cast %185 : vector<8x16xf32> to vector<1x8x16xf32>
    tpu.vector_store %arg8[%c3_155, %c0_156, %c0_157], %188 {strides = array<i32>} : memref<4x8x16xf32, #tpu.memory_space<vmem>>, vector<1x8x16xf32>,
    %c1_i32_158 = arith.constant 1 : i32
    %189 = arith.cmpi eq, %arg1, %c1_i32_158 : i32
    %190 = arith.extui %189 : i1 to i32
    %c0_i32_159 = arith.constant 0 : i32
    %191 = arith.cmpi ne, %190, %c0_i32_159 : i32
    scf.if %191 {
      %c0_160 = arith.constant 0 : index
      %c0_161 = arith.constant 0 : index
      %c0_162 = arith.constant 0 : index
      %192 = vector.load %arg7[%c0_160, %c0_161, %c0_162] : memref<4x8x16xf32, #tpu.memory_space<vmem>>, vector<4x8x16xf32>
      %cst_163 = arith.constant dense<0.000000e+00> : vector<4x16xf32>
      %193 = vector.multi_reduction <add>, %192, %cst_163 [1] : vector<4x8x16xf32> to vector<4x16xf32>
      %c0_164 = arith.constant 0 : index
      %c0_165 = arith.constant 0 : index
      %c0_166 = arith.constant 0 : index
      %194 = vector.load %arg4[%c0_164, %c0_165, %c0_166] : memref<1x4x16xf32, #tpu.memory_space<vmem>>, vector<1x4x16xf32>
      %195 = vector.shape_cast %194 : vector<1x4x16xf32> to vector<4x16xf32>
      %196 = vector.shape_cast %193 : vector<4x16xf32> to vector<1x4x16xf32>
      tpu.vector_store %arg4[%c0_164, %c0_165, %c0_166], %196 {strides = array<i32>} : memref<1x4x16xf32, #tpu.memory_space<vmem>>, vector<1x4x16xf32>,
      %c0_167 = arith.constant 0 : index
      %c0_168 = arith.constant 0 : index
      %c0_169 = arith.constant 0 : index
      %197 = vector.load %arg8[%c0_167, %c0_168, %c0_169] : memref<4x8x16xf32, #tpu.memory_space<vmem>>, vector<4x8x16xf32>
      %cst_170 = arith.constant dense<0.000000e+00> : vector<4x16xf32>
      %198 = vector.multi_reduction <add>, %197, %cst_170 [1] : vector<4x8x16xf32> to vector<4x16xf32>
      %c0_171 = arith.constant 0 : index
      %c0_172 = arith.constant 0 : index
      %c0_173 = arith.constant 0 : index
      %199 = vector.load %arg5[%c0_171, %c0_172, %c0_173] : memref<1x4x16xf32, #tpu.memory_space<vmem>>, vector<1x4x16xf32>
      %200 = vector.shape_cast %199 : vector<1x4x16xf32> to vector<4x16xf32>
      %201 = vector.shape_cast %198 : vector<4x16xf32> to vector<1x4x16xf32>
      tpu.vector_store %arg5[%c0_171, %c0_172, %c0_173], %201 {strides = array<i32>} : memref<1x4x16xf32, #tpu.memory_space<vmem>>, vector<1x4x16xf32>,
      %c0_174 = arith.constant 0 : index
      %c0_175 = arith.constant 0 : index
      %202 = vector.load %arg9[%c0_174, %c0_175] : memref<8x16xf32, #tpu.memory_space<vmem>>, vector<8x16xf32>
      %c0_176 = arith.constant 0 : index
      %c0_177 = arith.constant 0 : index
      %c0_178 = arith.constant 0 : index
      %203 = vector.load %arg6[%c0_176, %c0_177, %c0_178] : memref<1x8x16xf32, #tpu.memory_space<vmem>>, vector<1x8x16xf32>
      %204 = vector.shape_cast %203 : vector<1x8x16xf32> to vector<8x16xf32>
      %205 = vector.shape_cast %202 : vector<8x16xf32> to vector<1x8x16xf32>
      tpu.vector_store %arg6[%c0_176, %c0_177, %c0_178], %205 {strides = array<i32>} : memref<1x8x16xf32, #tpu.memory_space<vmem>>, vector<1x8x16xf32>,
    } else {
    }
    return
  }
  func.func @transform_0(%arg0: i32, %arg1: i32) -> (i32, i32, i32, i32) {
    %c0_i32 = arith.constant 0 : i32
    %c0_i32_0 = arith.constant 0 : i32
    %c0_i32_1 = arith.constant 0 : i32
    return %arg0, %c0_i32, %arg1, %c0_i32_0 : i32, i32, i32, i32
  }
  func.func @transform_1(%arg0: i32, %arg1: i32) -> (i32, i32, i32) {
    %c0_i32 = arith.constant 0 : i32
    %c0_i32_0 = arith.constant 0 : i32
    return %arg0, %arg1, %c0_i32 : i32, i32, i32
  }
  func.func @transform_2(%arg0: i32, %arg1: i32) -> (i32, i32, i32) {
    %c0_i32 = arith.constant 0 : i32
    %c0_i32_0 = arith.constant 0 : i32
    %c0_i32_1 = arith.constant 0 : i32
    return %arg0, %c0_i32, %c0_i32_0 : i32, i32, i32
  }
  func.func @transform_3(%arg0: i32, %arg1: i32) -> (i32, i32, i32) {
    %c0_i32 = arith.constant 0 : i32
    %c0_i32_0 = arith.constant 0 : i32
    %c0_i32_1 = arith.constant 0 : i32
    return %arg0, %c0_i32, %c0_i32_0 : i32, i32, i32
  }
  func.func @transform_4(%arg0: i32, %arg1: i32) -> (i32, i32, i32) {
    %c0_i32 = arith.constant 0 : i32
    %c0_i32_0 = arith.constant 0 : i32
    %c0_i32_1 = arith.constant 0 : i32
    return %arg0, %c0_i32, %c0_i32_0 : i32, i32, i32
  }
}

</mosaic_0001>

<bundles_post_ra>
// kernel: tpu_custom_call.1
= control target key start
LH: loop header
LB: loop body
LE: loop exit
PB: predicated region body
PF: predicated region fallthrough
CT: control target
= control target key end

     0   :  { %s1559_s0 = inlined_call_operand.hbm [shape: f32[2,4,16,16], index: 0, kind: input, shape index: {}]   ;;  %s1560_s1 = inlined_call_operand.hbm [shape: s32[2,16,16], index: 1, kind: input, shape index: {}]   ;;  %s1561_s2 = inlined_call_operand.hbm [shape: f32[2,4,16], index: 2, kind: output, shape index: {0}]   ;;  %s1562_s3 = inlined_call_operand.hbm [shape: f32[2,4,16], index: 3, kind: output, shape index: {1}]   ;;  %s1563_s4 = inlined_call_operand.hbm [shape: f32[2,8,16], index: 4, kind: output, shape index: {2}]  }
   0x1   :  { %1575 = sst [smem:[#allocation26_spill]] %s1559_s0 }
   0x2   :  { %1576 = sst [smem:[#allocation27_spill]] %s1561_s2 }
   0x3   :  { %1577 = sst [smem:[#allocation28_spill]] %s1563_s4 }
   0x4   :  { %10 = vsyncpa [#allocation6], 0 }
   0x5   :  { %12 = vsyncpa [#allocation6 + $0x1], 0 }
   0x6   :  { %13 = vsyncpa [#allocation9], 0 }
   0x7   :  { %15 = vsyncpa [#allocation9 + $0x1], 0 }
   0x8   :  { %16 = vsyncpa [#allocation7], 0 }
   0x9   :  { %18 = vsyncpa [#allocation7 + $0x1], 0 }
   0xa   :  { %19 = vsyncpa [#allocation12], 0 }
   0xb   :  { %21 = vsyncpa [#allocation12 + $0x1], 0  ;;  %s1174_s15 = smov 0   ;;  %s1176_s16 = smov 0  }
   0xc   :  { %s1178_s17 = smov 0   ;;  %s1180_s18 = smov 0  }
   0xd   :  { %s1182_s19 = smov 0   ;;  %s1184_s20 = smov 0  }
   0xe   :  { %s1186_s21 = smov 0   ;;  %s1188_s22 = smov 0  }
   0xf   :  { %s1190_s23 = smov 0   ;;  %s1192_s24 = smov 0  }
  0x10   :  { %s1194_s25 = smov 0  }
  0x11 LB: > { %1578 = sst [smem:[#allocation18_spill]] %s1097_s15  ;;  %s1228_s26 = sadd.s32 4294967295, %s1137_s25   ;;  %s1137_s25 = sphi %s1194_s25, %s27_s25   ;;  %s1133_s24 = sphi %s1192_s24, %s1615_s24   ;;  %s1129_s23 = sphi %s1190_s23, %s1614_s23   ;;  %s1125_s22 = sphi %s1188_s22, %s1613_s22   ;;  %s1121_s21 = sphi %s1186_s21, %s1612_s21   ;;  %s1117_s20 = sphi %s1184_s20, %s1605_s20   ;;  %s1113_s19 = sphi %s1182_s19, %s1611_s19   ;;  %s1109_s18 = sphi %s1180_s18, %s1610_s18   ;;  %s1105_s17 = sphi %s1178_s17, %s1603_s17   ;;  %s1101_s16 = sphi %s1176_s16, %s1609_s16   ;;  %s1097_s15 = sphi %s1174_s15, %s1608_s15  }
  0x12   : > { %1579 = sst [smem:[#allocation19_spill]] %s1105_s17  ;;  %s1566_s27 = sadd.s32 4294967294, %s1137_s25  }
  0x13   : > { %1580 = sst [smem:[#allocation20_spill]] %s1117_s20  ;;  %s36_s28 = sadd.s32 1, %s1129_s23 }
  0x14   : > { %s39_s29 = sadd.s32 1, %s1133_s24  ;;  %p37_p0 = scmp.ge.s32.totalorder %s36_s28, 2 }
  0x15   : > { %s48_s30 = sadd.s32 1, %s1117_s20  ;;  %p55_p1 = scmp.ne.s32.totalorder %s1117_s20, %s1113_s19 }
  0x16   : > { %p56_p2 = scmp.eq.s32.totalorder %s1137_s25, 0  ;;  %s1617_s28 = smov (%p37_p0, %s36_s28), 0 }
  0x17   : > { %1581 = sst [smem:[#allocation21_spill]] %s1617_s28  ;;  %s1619_s29 = smov (!%p37_p0, %s39_s29), %s1133_s24 }
  0x18   : > { %s44_s5 = ssub.s32 %s1129_s23, %s1617_s28  ;;  %p1242_p3 = por %p56_p2, %p55_p1 }
  0x19   : > { %p41_p4 = scmp.ge.s32.totalorder %s1619_s29, 2  ;;  %p61_p5 = scmp.ne.s32.totalorder %s1113_s19, %s1109_s18 }
  0x1a   : > { %p62_p6 = scmp.eq.s32.totalorder %s1228_s26, 0  ;;  %s102_s7 = sadd.s32 1, %s1105_s17 }
  0x1b   : > { %s1621_s29 = smov (%p41_p4, %s1619_s29), 0  ;;  %p112_p8 = scmp.ne.s32.totalorder %s1105_s17, %s1101_s16 }
  0x1c   : > { %1583 = sst [smem:[#allocation22_spill]] %s1621_s29  ;;  %p1251_p7 = por %p62_p6, %p61_p5 }
  0x1d   : > { %s43_s9 = ssub.s32 %s1133_s24, %s1621_s29  ;;  %p113_p9 = scmp.eq.s32.totalorder %s1228_s26, 3 }
  0x1e   : > { %s1584_s8 = scalar_select %p1251_p7, 1, 0 }
  0x1f   : > { %s45_s10 = sor.u32 %s44_s5, %s43_s9  ;;  %p100_p10 = scmp.eq.s32.totalorder %s43_s9, 0 }
  0x20   : > { %p46_p11 = scmp.eq.s32.totalorder %s45_s10, 0  ;;  %p1260_p12 = por %p113_p9, %p112_p8 }
  0x21   : > { %s1265_s12 = scalar_select %p100_p10, %s1105_s17, %s102_s7  }
  0x22   : > { %s1585_s11 = scalar_select %p1260_p12, 1, 0 }
  0x23   : > { %1586 = sst [smem:[#allocation23_spill]] %s1265_s12  ;;  %p118_p13 = scmp.ne.s32.totalorder %s1101_s16, %s1097_s15 }
  0x24   : > { %s1268_s13 = scalar_select %p46_p11, %s1117_s20, %s48_s30  }
  0x25   : > { %p119_p0 = scmp.eq.s32.totalorder %s1566_s27, 3  ;;  %p784_p1 = scmp.lt.s32.totalorder %s1137_s25, 4 }
  0x26   : > { %1587 = sst [smem:[#allocation24_spill]] %s1268_s13  ;;  %s1280_s18 = sand.u32 1, %s1117_s20  }
  0x27   : > { %p1275_p2 = por %p119_p0, %p118_p13  ;;  %s729_s5 = sshll.u32 %s1280_s18, 5 }
  0x28   : > { %s730_s9 = sshll.u32 %s1133_s24, 3  ;;  %s195_s29 = scalar_lea.vmem [#allocation5], %s729_s5 }
  0x29   : > { %s1588_s14 = scalar_select %p1275_p2, 1, 0 }
  0x2a   : > { %s200_s10 = sadd.s32 %s1129_s23, %s730_s9  ;;  %s203_s7 = sshll.u32 %s195_s29, 4  ;;  %s1285_s7 = int_to_ptr.vmem [resolvable:$true] %s203_s7 }
  0x2b   : > { %1589 = sst [smem:[#allocation25_spill]] %s1588_s14  ;;  %s731_s28 = sshll.u32 %s200_s10, 7 }
  0x2c   : > { %s1590_s0 = sld [smem:[#allocation26_spill]]  ;;  %p1294_p4 = pnand %p784_p1, %p1242_p3 }
  0x2d   : > { %s192_s29 = scalar_lea.sflag [#allocation6], %s1280_s18 }
  0x2e   : > { %p893_p6 = pneg %p1294_p4 }
  0x32   : > { %s1290_s27 = scalar_lea.hbm %s1590_s0, %s731_s28  ;;  %s896_s13 = scalar_lea.hbm %s1590_s0, 2048 }
  0x33   : > { %s891_s5 = scalar_lea.hbm %s1290_s27, 512  ;;  %p897_p3 = scmp.lt.u32.totalorder %s1290_s27, %s1590_s0 }
  0x34   : > { %p892_p5 = scmp.ne.s32.totalorder %s1290_s27, %s891_s5  ;;  %p898_p10 = scmp.lt.u32.totalorder %s896_s13, %s891_s5 }
  0x35   : > { %p900_p13 = scmp.lt.u32.totalorder %s891_s5, %s1290_s27 }
  0x36   : > { %p894_p8 = pnand %p893_p6, %p892_p5  ;;  %p899_p11 = por %p898_p10, %p897_p3 }
  0x38   : > { %p895_p9 = pneg %p894_p8  ;;  %p901_p0 = por %p900_p13, %p899_p11 }
  0x3a   : > { %p902_p1 = pnand %p901_p0, %p895_p9 }
  0x3c   : > { %905 = shalt.err (!%p902_p1)
}
  0x3d   : > { %s906_s30 = scalar_lea.vmem %s1285_s7, 512  ;;  %s1139_s28 = smov [#allocation5]  }
  0x3e   : > { %p907_p5 = scmp.ne.s32.totalorder %s1285_s7, %s906_s30  ;;  %s911_s6 = sshll.u32 %s1139_s28, 4  ;;  %s912_s6 = int_to_ptr.vmem [resolvable:$false] %s911_s6 }
  0x3f   : > { %s913_s9 = scalar_lea.vmem %s912_s6, 1024  ;;  %p914_p12 = scmp.lt.s32.totalorder %s1285_s7, %s912_s6 }
  0x40   : > { %p909_p8 = pnand %p907_p5, %p893_p6  ;;  %p915_p3 = scmp.lt.s32.totalorder %s913_s9, %s906_s30 }
  0x42   : > { %p910_p2 = pneg %p909_p8  ;;  %p916_p10 = por %p915_p3, %p914_p12 }
  0x44   : > { %p917_p11 = pnand %p916_p10, %p910_p2 }
  0x46   : > { %920 = shalt.err (!%p917_p11)
}
  0x47   : > { %s1140_s5 = smov 256   ;;  %s1141_s13 = smov 128  }
  0x48   : > { %s1142_s10 = smov 8   ;;  %p735_p12 = scmp.ge.s32.totalorder %s1137_s25, 1 }
  0x49   : > { %770 = dma.hbm_to_vmem [thread:$0]  (!%p1294_p4), %s1290_s27, 512, %s1285_s7, %s192_s29, %s1140_s5, %s1141_s13, %s1142_s10  }
  0x4a   : > { %p231_p2 = scmp.lt.s32.totalorder %s1137_s25, 5  ;;  %s732_s30 = sshll.u32 %s1280_s18, 3 }
  0x4b   : > { %s733_s6 = sshll.u32 %s1133_s24, 1  ;;  %s217_s9 = scalar_lea.vmem [#allocation8], %s732_s30 }
  0x4c   : > { %p1329_p9 = pnand %p735_p12, %p231_p2  ;;  %s226_s0 = sshll.u32 %s217_s9, 4  ;;  %s1335_s0 = int_to_ptr.vmem [resolvable:$true] %s226_s0 }
  0x4d   : > { %s222_s12 = sadd.s32 %s1129_s23, %s733_s6  ;;  %s214_s2 = scalar_lea.sflag [#allocation9], %s1280_s18 }
  0x4e   : > { %s734_s17 = sshll.u32 %s222_s12, 7  ;;  %s926_s5 = scalar_lea.hbm %s1560_s1, 512 }
  0x4f   : > { %s224_s4 = scalar_lea.hbm %s1560_s1, %s734_s17 }
  0x50   : > { %s921_s27 = scalar_lea.hbm %s224_s4, 128  ;;  %p927_p5 = scmp.lt.u32.totalorder %s224_s4, %s1560_s1 }
  0x51   : > { %p922_p13 = scmp.ne.s32.totalorder %s224_s4, %s921_s27  ;;  %p928_p8 = scmp.lt.u32.totalorder %s926_s5, %s921_s27 }
  0x52   : > { %p930_p10 = scmp.lt.u32.totalorder %s921_s27, %s224_s4 }
  0x53   : > { %p924_p0 = pnand %p922_p13, %p893_p6  ;;  %p929_p3 = por %p928_p8, %p927_p5 }
  0x55   : > { %p925_p1 = pneg %p924_p0  ;;  %p931_p11 = por %p930_p10, %p929_p3 }
  0x57   : > { %p932_p12 = pnand %p931_p11, %p925_p1 }
  0x59   : > { %935 = shalt.err (!%p932_p12)
}
  0x5a   : > { %s936_s15 = scalar_lea.vmem %s1335_s0, 128  ;;  %s1143_s17 = smov [#allocation8]  }
  0x5b   : > { %p937_p2 = scmp.ne.s32.totalorder %s1335_s0, %s936_s15  ;;  %s941_s12 = sshll.u32 %s1143_s17, 4  ;;  %s942_s12 = int_to_ptr.vmem [resolvable:$false] %s941_s12 }
  0x5c   : > { %s943_s14 = scalar_lea.vmem %s942_s12, 256  ;;  %p944_p7 = scmp.lt.s32.totalorder %s1335_s0, %s942_s12 }
  0x5d   : > { %p939_p13 = pnand %p937_p2, %p893_p6  ;;  %p945_p5 = scmp.lt.s32.totalorder %s943_s14, %s936_s15 }
  0x5f   : > { %p940_p0 = pneg %p939_p13  ;;  %p946_p8 = por %p945_p5, %p944_p7 }
  0x61   : > { %p947_p3 = pnand %p946_p8, %p940_p0 }
  0x63   : > { %950 = shalt.err (!%p947_p3)
}
  0x64   : > { %773 = dma.hbm_to_vmem [thread:$0]  (!%p1294_p4), %s224_s4, 128, %s1335_s0, %s214_s2  }
  0x65   : > { %235 = sbr.rel (%p1329_p9) target bundleno = 269 (0x10d), region = 28  ;;  %s237_s18 = sand.u32 (!%p1329_p9), 1, %s1113_s19  }
  0x66   : > { %s736_s30 = sshll.u32 (!%p1329_p9), %s237_s18, 5  ;;  %s238_s6 = scalar_lea.sflag (!%p1329_p9), [#allocation6], %s237_s18 }
  0x67   : > { %s1362_s9 = scalar_lea.vmem (!%p1329_p9), [#allocation5], %s736_s30  ;;  %p1593_p6 = scmp.ne.s32.totalorder (!%p1329_p9), %s1584_s8, 0 }
  0x6c   : > { %1080 = dma.done.wait (%p1593_p6), %s238_s6, 512  }
  0x6d   : > { %1082 = vsyncadd (%p1593_p6), %s238_s6, 4294966784  ;;  %s737_s27 = sshll.u32 %s237_s18, 3  ;;  %s247_s20 = scalar_lea.sflag [#allocation9], %s237_s18 }
  0x6e   : > { %s1368_s7 = scalar_lea.vmem [#allocation8], %s737_s27 }
  0x6f   : > { %1084 = dma.done.wait (%p1593_p6), %s247_s20, 128  }
  0x70   : > { %1086 = vsyncadd (%p1593_p6), %s247_s20, 4294967168  ;;  %s1375_s0 = sand.u32 1, %s1101_s16   ;;  %p741_p7 = scmp.ne.s32.totalorder %s1121_s21, 0 }
  0x71   : > { %s738_s2 = sshll.u32 %s1375_s0, 2  ;;  %s740_s4 = sshll.u32 %s1375_s0, 3  ;;  %vm294_vm0 = vcmask (!%p741_p7), 130048   ;;  %v1144_v0 = vmov (!%p741_p7), 0.0  }
  0x72   : > { %s1379_s28 = scalar_lea.vmem [#allocation10], %s738_s2  ;;  %s1381_s29 = scalar_lea.vmem [#allocation11], %s738_s2  ;;  %295 = vst.msk [vmem:[#allocation2] sm:$0xff] (!%p741_p7), %vm294_vm0, %v1144_v0  ;;  %296 = vst.msk [vmem:[#allocation2 + $0x8] sm:$0xff] (!%p741_p7), %vm294_vm0, %v1144_v0 }
  0x73   : > { %s1383_s5 = scalar_lea.vmem [#allocation13], %s740_s4  ;;  %293 = sbr.rel (%p741_p7) target bundleno = 122 (0x7a), region = 40  ;;  %297 = vst.msk [vmem:[#allocation2 + $0x10] sm:$0xff] (!%p741_p7), %vm294_vm0, %v1144_v0  ;;  %298 = vst.msk [vmem:[#allocation2 + $0x18] sm:$0xff] (!%p741_p7), %vm294_vm0, %v1144_v0 }
  0x74   : > { %299 = vst.msk [vmem:[#allocation3] sm:$0xff] (!%p741_p7), %vm294_vm0, %v1144_v0  ;;  %300 = vst.msk [vmem:[#allocation3 + $0x8] sm:$0xff] (!%p741_p7), %vm294_vm0, %v1144_v0 }
  0x75   : > { %301 = vst.msk [vmem:[#allocation3 + $0x10] sm:$0xff] (!%p741_p7), %vm294_vm0, %v1144_v0  ;;  %302 = vst.msk [vmem:[#allocation3 + $0x18] sm:$0xff] (!%p741_p7), %vm294_vm0, %v1144_v0 }
  0x76   : > { %303 = vst.msk [vmem:[#allocation4] sm:$0xff] (!%p741_p7), %vm294_vm0, %v1144_v0 }
  0x7a PF: > { %v305_v1 = vld [vmem:[%s1362_s9] sm:$0xff]  ;;  %v742_v2 = vld [vmem:[%s1362_s9 + $0x8] sm:$0xff]  ;;  %v743_v4 = vld [vmem:[%s1362_s9 + $0x10] sm:$0xff]  ;;  %vm350_vm5 = vcmask 130048   ;;  %v1145_v31 = vmov 0.0   ;;  %p748_p4 = scmp.ne.s32.totalorder %s1121_s21, 1 }
  0x7b   : > { %v308_v3 = vmax.f32 %v305_v1, %v742_v2  ;;  %v744_v5 = vld [vmem:[%s1362_s9 + $0x18] sm:$0xff]  ;;  %v304_v21 = vld [vmem:[%s1368_s7] sm:$0xff]  ;;  %v404_v57 = vld [vmem:[#allocation2 + $0x18] sm:$0xff]  ;;  %vm454_vm6 = vcmask (!%p748_p4), 1041409   ;;  %vm456_vm7 = vcmask (!%p748_p4), 1042434   ;;  %vm458_vm8 = vcmask (!%p748_p4), 1043459  }
  0x7c   : > { %vm319_vm1 = vcmp.eq.s32.totalorder %v304_v21, 0  ;;  %vm326_vm2 = vcmp.eq.s32.totalorder %v304_v21, 1  ;;  %vm333_vm3 = vcmp.eq.s32.totalorder %v304_v21, 2  ;;  %vm340_vm4 = vcmp.eq.s32.totalorder %v304_v21, 3  ;;  %v357_v36 = vld [vmem:[#allocation2] sm:$0xff]  ;;  %v372_v38 = vld [vmem:[#allocation2 + $0x8] sm:$0xff] }
  0x7d   : > { %v311_v6 = vmax.f32 %v308_v3, %v743_v4  ;;  %v320_v24 = vsel %vm319_vm1, %v305_v1, 0.0  ;;  %v327_v25 = vsel %vm326_vm2, %v742_v2, 0.0  ;;  %v334_v27 = vsel %vm333_vm3, %v743_v4, 0.0  ;;  %v361_v43 = vld [vmem:[#allocation3] sm:$0xff]  ;;  %v377_v44 = vld [vmem:[#allocation3 + $0x8] sm:$0xff]  ;;  %v388_v45 = vld [vmem:[#allocation2 + $0x10] sm:$0xff] }
  0x7e   : > { %v328_v26 = vadd.f32 %v327_v25, %v320_v24  ;;  %v341_v29 = vsel %vm340_vm4, %v744_v5, 0.0  ;;  %v362_v32 = vsel %vm319_vm1, 1.0, %v1145_v31  ;;  %v378_v33 = vsel %vm326_vm2, 1.0, %v1145_v31  ;;  %v393_v56 = vld [vmem:[#allocation3 + $0x10] sm:$0xff]  ;;  %v346_v58 = vld [vmem:[#allocation4] sm:$0xff]  ;;  %v409_v63 = vld [vmem:[#allocation3 + $0x18] sm:$0xff] }
  0x7f   : > { %v314_v7 = vmax.f32 %v311_v6, %v744_v5  ;;  %v394_v40 = vsel %vm333_vm3, 1.0, %v1145_v31  ;;  %v410_v47 = vsel %vm340_vm4, 1.0, %v1145_v31  ;;  %vm461_vm9 = vcmask (!%p748_p4), 125952  }
  0x80   : > { %v335_v28 = vadd.f32 %v334_v27, %v328_v26 }
  0x81   : > { %v315_v8 = vsub.f32 %v305_v1, %v314_v7  ;;  %v322_v9 = vsub.f32 %v742_v2, %v314_v7  ;;  %v329_v10 = vsub.f32 %v743_v4, %v314_v7  ;;  %v336_v11 = vsub.f32 %v744_v5, %v314_v7 }
  0x82   : > { %v342_v41 = vadd.f32 %v341_v29, %v335_v28 }
  0x83   : > { %v316_v12 = vmul.f32 1.442695, %v315_v8  ;;  %v323_v13 = vmul.f32 1.442695, %v322_v9  ;;  %v330_v14 = vmul.f32 1.442695, %v329_v10 }
  0x84   : > { %v337_v15 = vmul.f32 1.442695, %v336_v11 }
  0x85   : > { %879 = vpow2.f32 %v316_v12 }
  0x86   : > { %881 = vpow2.f32 %v323_v13 }
  0x87   : > { %883 = vpow2.f32 %v330_v14 }
  0x88   : > { %885 = vpow2.f32 %v337_v15 }
  0x8f   : > { %v880_v16 = vpop.eup %879 }
  0x90   : > { %v882_v17 = vpop.eup %881 }
  0x91   : > { %v884_v18 = vpop.eup %883  ;;  %v325_v19 = vadd.f32 %v882_v17, %v880_v16 }
  0x92   : > { %v886_v20 = vpop.eup %885 }
  0x93   : > { %v332_v22 = vadd.f32 %v884_v18, %v325_v19 }
  0x95   : > { %v339_v23 = vadd.f32 %v886_v20, %v332_v22 }
  0x97   : > { %887 = vrcp.f32 %v339_v23 }
  0x98   : > { %889 = vlog2.f32 %v339_v23 }
  0xa1   : > { %v888_v30 = vpop.eup %887 }
  0xa2   : > { %v890_v34 = vpop.eup %889  ;;  %v356_v35 = vmul.f32 %v888_v30, %v880_v16  ;;  %v370_v37 = vmul.f32 %v888_v30, %v882_v17  ;;  %v386_v39 = vmul.f32 %v888_v30, %v884_v18  ;;  %v402_v46 = vmul.f32 %v888_v30, %v886_v20 }
  0xa3   : > { %v345_v42 = vmul.f32 0.6931472, %v890_v34 }
  0xa4   : > { %v358_v48 = vsel %vm319_vm1, %v356_v35, 0.0  ;;  %v363_v49 = vadd.f32 %v362_v32, %v356_v35  ;;  %v373_v50 = vsel %vm326_vm2, %v370_v37, 0.0  ;;  %v379_v51 = vadd.f32 %v378_v33, %v370_v37 }
  0xa5   : > { %v347_v52 = vadd.f32 %v345_v42, %v314_v7  ;;  %v359_v53 = vadd.f32 %v358_v48, %v357_v36  ;;  %v374_v54 = vadd.f32 %v373_v50, %v372_v38  ;;  %v389_v55 = vsel %vm333_vm3, %v386_v39, 0.0  ;;  %417 = sbr.rel (%p748_p4) target bundleno = 195 (0xc3), region = 44 }
  0xa6   : > { %v364_v59 = vadd.f32 %v363_v49, %v361_v43  ;;  %v380_v60 = vadd.f32 %v379_v51, %v377_v44  ;;  %v390_v61 = vadd.f32 %v389_v55, %v388_v45  ;;  %v395_v62 = vadd.f32 %v394_v40, %v386_v39 }
  0xa7   : > { %v348_v0 = vsub.f32 %v347_v52, %v342_v41  ;;  %360 = vst.msk [vmem:[#allocation2] sm:$0xff] %vm350_vm5, %v359_v53  ;;  %375 = vst.msk [vmem:[#allocation2 + $0x8] sm:$0xff] %vm350_vm5, %v374_v54  ;;  %v405_v1 = vsel %vm340_vm4, %v402_v46, 0.0  ;;  %v411_v2 = vadd.f32 %v410_v47, %v402_v46 }
  0xa8   : > { %365 = vst.msk [vmem:[#allocation3] sm:$0xff] %vm350_vm5, %v364_v59  ;;  %381 = vst.msk [vmem:[#allocation3 + $0x8] sm:$0xff] %vm350_vm5, %v380_v60  ;;  %v396_v3 = vadd.f32 %v395_v62, %v393_v56  ;;  %v406_v4 = vadd.f32 %v405_v1, %v404_v57 }
  0xa9   : > { %391 = vst.msk [vmem:[#allocation2 + $0x10] sm:$0xff] %vm350_vm5, %v390_v61  ;;  %v349_v5 = vadd.f32 %v348_v0, %v346_v58  ;;  %v412_v6 = vadd.f32 %v411_v2, %v409_v63 }
  0xaa   : > { %397 = vst.msk [vmem:[#allocation3 + $0x10] sm:$0xff] %vm350_vm5, %v396_v3  ;;  %407 = vst.msk [vmem:[#allocation2 + $0x18] sm:$0xff] %vm350_vm5, %v406_v4 }
  0xab   : > { %351 = vst.msk [vmem:[#allocation4] sm:$0xff] %vm350_vm5, %v349_v5  ;;  %413 = vst.msk [vmem:[#allocation3 + $0x18] sm:$0xff] %vm350_vm5, %v412_v6 }
  0xae   : > { %v418_v7 = vld [vmem:[#allocation2] sm:$0xff]  ;;  %v419_v8 = vld [vmem:[#allocation2 + $0x8] sm:$0xff] }
  0xaf   : > { %v422_v11 = vsel %vm350_vm5, %v418_v7, 0.0  ;;  %v429_v12 = vsel %vm350_vm5, %v419_v8, 0.0  ;;  %v463_v14 = vld [vmem:[#allocation3] sm:$0xff]  ;;  %v464_v19 = vld [vmem:[#allocation3 + $0x8] sm:$0xff] }
  0xb0   : > { %v420_v9 = vld [vmem:[#allocation2 + $0x10] sm:$0xff]  ;;  %v423_v15 = vrot.slane %v422_v11, 4  ;;  %v430_v16 = vrot.slane %v429_v12, 4  ;;  %v467_v23 = vsel %vm350_vm5, %v463_v14, 0.0  ;;  %v474_v24 = vsel %vm350_vm5, %v464_v19, 0.0 }
  0xb1   : > { %v421_v10 = vld [vmem:[#allocation2 + $0x18] sm:$0xff]  ;;  %v436_v13 = vsel %vm350_vm5, %v420_v9, 0.0  ;;  %v465_v20 = vld [vmem:[#allocation3 + $0x10] sm:$0xff]  ;;  %v468_v30 = vrot.slane %v467_v23, 4  ;;  %v475_v32 = vrot.slane %v474_v24, 4 }
  0xb2   : > { %v437_v17 = vrot.slane %v436_v13, 4  ;;  %v443_v18 = vsel %vm350_vm5, %v421_v10, 0.0  ;;  %v466_v22 = vld [vmem:[#allocation3 + $0x18] sm:$0xff]  ;;  %v481_v25 = vsel %vm350_vm5, %v465_v20, 0.0  ;;  %v504_v26 = vld [vmem:[#allocation4] sm:$0xff]  ;;  %v424_v27 = vadd.f32 %v423_v15, %v422_v11 }
  0xb3   : > { %v444_v21 = vrot.slane %v443_v18, 4  ;;  %v431_v28 = vadd.f32 %v430_v16, %v429_v12  ;;  %505 = vst.msk [vmem:[%s1383_s5] sm:$0xff] %vm350_vm5, %v504_v26  ;;  %v482_v33 = vrot.slane %v481_v25, 4  ;;  %v488_v34 = vsel %vm350_vm5, %v466_v22, 0.0 }
  0xb4   : > { %v438_v29 = vadd.f32 %v437_v17, %v436_v13  ;;  %v425_v35 = vrot.slane %v424_v27, 2  ;;  %v469_v38 = vadd.f32 %v468_v30, %v467_v23  ;;  %v476_v40 = vadd.f32 %v475_v32, %v474_v24 }
  0xb5   : > { %v445_v31 = vadd.f32 %v444_v21, %v443_v18  ;;  %v432_v36 = vrot.slane %v431_v28, 2  ;;  %v483_v41 = vadd.f32 %v482_v33, %v481_v25  ;;  %v489_v42 = vrot.slane %v488_v34, 4 }
  0xb6   : > { %v439_v37 = vrot.slane %v438_v29, 2  ;;  %v426_v43 = vadd.f32 %v425_v35, %v424_v27  ;;  %v470_v46 = vrot.slane %v469_v38, 2  ;;  %v477_v48 = vrot.slane %v476_v40, 2 }
  0xb7   : > { %v446_v39 = vrot.slane %v445_v31, 2  ;;  %v433_v44 = vadd.f32 %v432_v36, %v431_v28  ;;  %v484_v49 = vrot.slane %v483_v41, 2  ;;  %v490_v50 = vadd.f32 %v489_v42, %v488_v34 }
  0xb8   : > { %v440_v45 = vadd.f32 %v439_v37, %v438_v29  ;;  %v427_v51 = vrot.slane %v426_v43, 1  ;;  %v471_v54 = vadd.f32 %v470_v46, %v469_v38  ;;  %v478_v56 = vadd.f32 %v477_v48, %v476_v40 }
  0xb9   : > { %v447_v47 = vadd.f32 %v446_v39, %v445_v31  ;;  %v434_v52 = vrot.slane %v433_v44, 1  ;;  %v485_v57 = vadd.f32 %v484_v49, %v483_v41  ;;  %v491_v58 = vrot.slane %v490_v50, 2 }
  0xba   : > { %v441_v53 = vrot.slane %v440_v45, 1  ;;  %v428_v59 = vadd.f32 %v427_v51, %v426_v43  ;;  %v472_v62 = vrot.slane %v471_v54, 1  ;;  %v479_v0 = vrot.slane %v478_v56, 1 }
  0xbb   : > { %v448_v55 = vrot.slane %v447_v47, 1  ;;  %v435_v60 = vadd.f32 %v434_v52, %v433_v44  ;;  %v486_v1 = vrot.slane %v485_v57, 1  ;;  %v492_v2 = vadd.f32 %v491_v58, %v490_v50 }
  0xbc   : > { %v442_v61 = vadd.f32 %v441_v53, %v440_v45  ;;  %v473_v4 = vadd.f32 %v472_v62, %v471_v54  ;;  %v480_v6 = vadd.f32 %v479_v0, %v478_v56 }
  0xbd   : > { %v449_v63 = vadd.f32 %v448_v55, %v447_v47  ;;  %v455_v3 = vsel %vm454_vm6, %v435_v60, %v428_v59  ;;  %v487_v7 = vadd.f32 %v486_v1, %v485_v57  ;;  %v493_v8 = vrot.slane %v492_v2, 1 }
  0xbe   : > { %v457_v5 = vsel %vm456_vm7, %v442_v61, %v455_v3  ;;  %v499_v11 = vsel %vm454_vm6, %v480_v6, %v473_v4 }
  0xbf   : > { %v459_v9 = vsel %vm458_vm8, %v449_v63, %v457_v5  ;;  %v494_v10 = vadd.f32 %v493_v8, %v492_v2  ;;  %v500_v12 = vsel %vm456_vm7, %v487_v7, %v499_v11 }
  0xc0   : > { %462 = vst.msk [vmem:[%s1379_s28] sm:$0xf] %vm461_vm9, %v459_v9 }
  0xc1   : > { %v501_v13 = vsel %vm458_vm8, %v494_v10, %v500_v12 }
  0xc2   : > { %503 = vst.msk [vmem:[%s1381_s29] sm:$0xf] %vm461_vm9, %v501_v13 }
  0xc3 PF: > { %s511_s21 = sand.u32 1, %s1228_s26   ;;  %s752_s8 = sshll.u32 %s1125_s22, 6 }
  0xc4   : > { %s1436_s15 = scalar_lea.hbm %s1562_s3, %s752_s8  ;;  %s543_s17 = sshll.u32 %s1381_s29, 4  ;;  %s1439_s17 = int_to_ptr.vmem [resolvable:$true] %s543_s17 }
  0xc5   : > { %s1594_s18 = sld [smem:[#allocation27_spill]]  ;;  %s1446_s9 = scalar_lea.sflag [#allocation12], %s511_s21 }
  0xc6   : > { %s951_s26 = scalar_lea.vmem %s1439_s17, 64  ;;  %p1596_p1 = scmp.ne.s32.totalorder %s1585_s11, 0 }
  0xc7   : > { %p952_p9 = scmp.ne.s32.totalorder %s1439_s17, %s951_s26  ;;  %s1146_s27 = smov [#allocation11]  }
  0xc8   : > { %s955_s20 = sshll.u32 %s1146_s27, 4  ;;  %s956_s20 = int_to_ptr.vmem [resolvable:$false] %s955_s20 }
  0xc9   : > { %p953_p10 = pnand %p952_p9, %p1596_p1  ;;  %s957_s7 = scalar_lea.vmem %s956_s20, 128 }
  0xca   : > { %p958_p12 = scmp.lt.s32.totalorder %s1439_s17, %s956_s20  ;;  %p959_p2 = scmp.lt.s32.totalorder %s957_s7, %s951_s26 }
  0xcb   : > { %s1595_s30 = smov %s1594_s18  ;;  %s1444_s6 = scalar_lea.hbm %s1594_s18, %s752_s8 }
  0xcc   : > { %p954_p11 = pneg %p953_p10  ;;  %p960_p13 = por %p959_p2, %p958_p12 }
  0xce   : > { %p961_p0 = pnand %p960_p13, %p954_p11 }
  0xd0   : > { %964 = shalt.err (!%p961_p0)
}
  0xd1   : > { %s965_s2 = scalar_lea.hbm %s1436_s15, 64  ;;  %s969_s21 = scalar_lea.hbm %s1562_s3, 128 }
  0xd2   : > { %p966_p5 = scmp.ne.s32.totalorder %s1436_s15, %s965_s2  ;;  %p970_p6 = scmp.lt.u32.totalorder %s1436_s15, %s1562_s3 }
  0xd3   : > { %p971_p7 = scmp.lt.u32.totalorder %s969_s21, %s965_s2  ;;  %p973_p9 = scmp.lt.u32.totalorder %s965_s2, %s1436_s15 }
  0xd4   : > { %p967_p8 = pnand %p966_p5, %p1596_p1 }
  0xd5   : > { %p972_p4 = por %p971_p7, %p970_p6 }
  0xd6   : > { %p968_p3 = pneg %p967_p8 }
  0xd7   : > { %p974_p10 = por %p973_p9, %p972_p4 }
  0xd9   : > { %p975_p11 = pnand %p974_p10, %p968_p3 }
  0xdb   : > { %978 = shalt.err (!%p975_p11)
}
  0xdc   : > { %762 = dma.vmem_to_hbm [thread:$0]  (%p1596_p1), %s1439_s17, 64, %s1436_s15, %s1446_s9  }
  0xdd   : > { %s530_s10 = sshll.u32 %s1379_s28, 4  ;;  %s754_s12 = sshll.u32 %s1125_s22, 7  ;;  %s1472_s10 = int_to_ptr.vmem [resolvable:$true] %s530_s10 }
  0xde   : > { %s1597_s26 = sld [smem:[#allocation28_spill]]  ;;  %s507_s20 = scalar_lea.sflag [#allocation7], %s1375_s0 }
  0xdf   : > { %s979_s7 = scalar_lea.vmem %s1472_s10, 64  ;;  %s1147_s2 = smov [#allocation10]  }
  0xe0   : > { %p980_p12 = scmp.ne.s32.totalorder %s1472_s10, %s979_s7  ;;  %s983_s15 = sshll.u32 %s1147_s2, 4  ;;  %s984_s15 = int_to_ptr.vmem [resolvable:$false] %s983_s15 }
  0xe1   : > { %s985_s22 = scalar_lea.vmem %s984_s15, 128  ;;  %p986_p0 = scmp.lt.s32.totalorder %s1472_s10, %s984_s15 }
  0xe2   : > { %p981_p2 = pnand %p980_p12, %p1596_p1  ;;  %p987_p5 = scmp.lt.s32.totalorder %s985_s22, %s979_s7 }
  0xe4   : > { %s1477_s27 = scalar_lea.hbm %s1597_s26, %s754_s12  ;;  %p982_p13 = pneg %p981_p2 }
  0xe5   : > { %p988_p8 = por %p987_p5, %p986_p0 }
  0xe7   : > { %p989_p3 = pnand %p988_p8, %p982_p13 }
  0xe9   : > { %992 = shalt.err (!%p989_p3)
}
  0xea   : > { %s993_s0 = scalar_lea.hbm %s1444_s6, 64  ;;  %s997_s4 = scalar_lea.hbm %s1595_s30, 128 }
  0xeb   : > { %p994_p6 = scmp.ne.s32.totalorder %s1444_s6, %s993_s0  ;;  %p998_p9 = scmp.lt.u32.totalorder %s1444_s6, %s1595_s30 }
  0xec   : > { %p999_p10 = scmp.lt.u32.totalorder %s997_s4, %s993_s0  ;;  %p1001_p12 = scmp.lt.u32.totalorder %s993_s0, %s1444_s6 }
  0xed   : > { %p995_p7 = pnand %p994_p6, %p1596_p1 }
  0xee   : > { %p1000_p11 = por %p999_p10, %p998_p9 }
  0xef   : > { %p996_p4 = pneg %p995_p7 }
  0xf0   : > { %p1002_p2 = por %p1001_p12, %p1000_p11 }
  0xf2   : > { %p1003_p13 = pnand %p1002_p2, %p996_p4 }
  0xf4   : > { %1006 = shalt.err (!%p1003_p13)
}
  0xf5   : > { %761 = dma.vmem_to_hbm [thread:$0]  (%p1596_p1), %s1472_s10, 64, %s1444_s6, %s507_s20  }
  0xf6   : > { %s556_s8 = sshll.u32 %s1383_s5, 4  ;;  %s1148_s12 = smov [#allocation13]   ;;  %s557_s8 = int_to_ptr.vmem [resolvable:$true] %s556_s8 }
  0xf7   : > { %s1007_s13 = scalar_lea.vmem %s557_s8, 128  ;;  %s1011_s14 = sshll.u32 %s1148_s12, 4  ;;  %s1012_s14 = int_to_ptr.vmem [resolvable:$false] %s1011_s14 }
  0xf8   : > { %p1008_p0 = scmp.ne.s32.totalorder %s557_s8, %s1007_s13  ;;  %s1013_s18 = scalar_lea.vmem %s1012_s14, 256 }
  0xf9   : > { %p1014_p3 = scmp.lt.s32.totalorder %s557_s8, %s1012_s14  ;;  %p1015_p6 = scmp.lt.s32.totalorder %s1013_s18, %s1007_s13 }
  0xfa   : > { %p1009_p5 = pnand %p1008_p0, %p1596_p1 }
  0xfb   : > { %p1016_p7 = por %p1015_p6, %p1014_p3 }
  0xfc   : > { %p1010_p8 = pneg %p1009_p5 }
  0xfe   : > { %p1017_p4 = pnand %p1016_p7, %p1010_p8 }
 0x100   : > { %1020 = shalt.err (!%p1017_p4)
}
 0x101   : > { %s1021_s5 = scalar_lea.hbm %s1477_s27, 128  ;;  %s1025_s20 = scalar_lea.hbm %s1597_s26, 256 }
 0x102   : > { %p1022_p9 = scmp.ne.s32.totalorder %s1477_s27, %s1021_s5  ;;  %p1026_p12 = scmp.lt.u32.totalorder %s1477_s27, %s1597_s26 }
 0x103   : > { %p1027_p2 = scmp.lt.u32.totalorder %s1025_s20, %s1021_s5  ;;  %p1029_p0 = scmp.lt.u32.totalorder %s1021_s5, %s1477_s27 }
 0x104   : > { %p1023_p10 = pnand %p1022_p9, %p1596_p1 }
 0x105   : > { %p1028_p13 = por %p1027_p2, %p1026_p12 }
 0x106   : > { %p1024_p11 = pneg %p1023_p10 }
 0x107   : > { %p1030_p5 = por %p1029_p0, %p1028_p13 }
 0x109   : > { %p1031_p8 = pnand %p1030_p5, %p1024_p11 }
 0x10b   : > { %1034 = shalt.err (!%p1031_p8)
}
 0x10c   : > { %763 = dma.vmem_to_hbm [thread:$0]  (%p1596_p1), %s557_s8, 128, %s1477_s27, %s1446_s9  }
 0x10d PF: > { %s1598_s15 = sld [smem:[#allocation18_spill]]  ;;  %s1599_s22 = sld [smem:[#allocation25_spill]] }
 0x10e   : > { %p785_p3 = scmp.ge.s32.totalorder %s1137_s25, 2 }
 0x113   : > { %s568_s0 = sand.u32 1, %s1598_s15   ;;  %p1600_p6 = scmp.ne.s32.totalorder %s1599_s22, 0 }
 0x114   : > { %s569_s28 = scalar_lea.sflag [#allocation7], %s568_s0 }
 0x115   : > { %p775_p7 = pnand %p785_p3, %p1600_p6 }
 0x117   : > { %1088 = dma.done.wait (!%p775_p7), %s569_s28, 64  }
 0x118   : > { %1090 = vsyncadd (!%p775_p7), %s569_s28, 4294967232  ;;  %s1601_s17 = sadd.s32 4294967294, %s1137_s25  }
 0x119   : > { %s577_s4 = sand.u32 1, %s1601_s17  }
 0x11a   : > { %s578_s29 = scalar_lea.sflag [#allocation12], %s577_s4 }
 0x11b   : > { %1092 = dma.done.wait (!%p775_p7), %s578_s29, 192  }
 0x11c   : > { %1094 = vsyncadd (!%p775_p7), %s578_s29, 4294967104  ;;  %s27_s25 = sadd.s32 1, %s1137_s25   ;;  %s1602_s11 = sld [smem:[#allocation19_spill]] }
 0x11d   : > { %p24_p1 = scmp.ge.s32.totalorder %s27_s25, 6   ;;  %s1603_s17 = sld [smem:[#allocation23_spill]] }
 0x11e   : > { %s1604_s9 = sld [smem:[#allocation20_spill]]  ;;  %s1605_s20 = sld [smem:[#allocation24_spill]] }
 0x11f   : > { %s1606_s27 = sld [smem:[#allocation21_spill]]  ;;  %s1607_s8 = sld [smem:[#allocation22_spill]] }
 0x120   : > { %s1608_s15 = smov %s1101_s16  ;;  %s1610_s18 = smov %s1113_s19 }
 0x121   : > { %s1612_s21 = smov %s1129_s23  ;;  %s1613_s22 = smov %s1133_s24 }
 0x122   : > { %s1609_s16 = smov %s1602_s11  ;;  %26 = sbr.rel (!%p24_p1) target bundleno = 17 (0x11), region = 135 }
 0x124   : > { %s1611_s19 = smov %s1604_s9 }
 0x125   : > { %s1614_s23 = smov %s1606_s27  ;;  %s1615_s24 = smov %s1607_s8 }
 0x129   :  { %592 = vsyncpa [#allocation6], 1 }
 0x12a   :  { %594 = vsyncpa [#allocation6 + $0x1], 1 }
 0x12b   :  { %595 = vsyncpa [#allocation9], 1 }
 0x12c   :  { %597 = vsyncpa [#allocation9 + $0x1], 1 }
 0x12d   :  { %598 = vsyncpa [#allocation7], 1 }
 0x12e   :  { %600 = vsyncpa [#allocation7 + $0x1], 1 }
 0x12f   :  { %601 = vsyncpa [#allocation12], 1 }
 0x130   :  { %603 = vsyncpa [#allocation12 + $0x1], 1 }

</bundles_post_ra>
